<compile_context>
chip_gen: v7x
topology: tpu7x:2x2x1
jax: 0.10.0
libtpu: 0.0.40
codegen_flags: <defaults>
</compile_context>

<pallas_src>
import jax
import jax.numpy as jnp
from jax.experimental import pallas as pl
from jax.experimental.pallas import tpu as pltpu


def critic_kernel(x_ref, w1_ref, b1_ref, w2_ref, b2_ref, o_ref):
    # Hidden layer on the MXU: [TB, D_in] @ [D_in, H], f32 accumulate.
    # x/w1 may be bf16 (v6e/v7x fast path) or f32 (v5e-safe); MXU handles both.
    h = jnp.dot(x_ref[...], w1_ref[...], preferred_element_type=jnp.float32)
    h = jnp.maximum(h + b1_ref[...].astype(jnp.float32), 0.0)          # bias + ReLU (VPU)
    # 64 -> 1 projection: VPU multiply + lane reduction instead of an N=1 MXU matmul.
    w2_row = w2_ref[...].astype(jnp.float32)                            # (1, H), broadcast
    y = jnp.sum(h * w2_row, axis=-1, keepdims=True)                     # (TB, 1)
    o_ref[...] = (y + b2_ref[0]).astype(o_ref.dtype)                    # SMEM scalar bias


def critic_forward(x, w1, b1, w2_row, b2, *, block_b=512):
    """Critic value head.

    x:      [B, D_in]  (f32 or bf16)
    w1:     [D_in, H]  (same dtype family as x is fine; f32 also OK)
    b1:     [1, H]     f32
    w2_row: [1, H]     f32  (second-layer weight, pre-transposed)
    b2:     [1]        f32  (second-layer bias, SMEM scalar)
    returns [B, 1] f32.
    """
    B, d_in = x.shape
    H = w1.shape[1]

    # Batch tile: multiple of 8 sublanes, capped at block_b (512 rows ~= 85% HBM roofline
    # in the tile sweep; x tile is well under VMEM limits on all of v5e/v6e/v7x).
    tb = min(block_b, B)
    tb = ((tb + 7) // 8) * 8
    b_pad = pl.cdiv(B, tb) * tb
    if b_pad != B:
        x = jnp.pad(x, ((0, b_pad - B), (0, 0)))      # padded rows sliced off below

    out = pl.pallas_call(
        critic_kernel,
        out_shape=jax.ShapeDtypeStruct((b_pad, 1), jnp.float32),
        grid=(b_pad // tb,),
        in_specs=[
            pl.BlockSpec((tb, d_in), lambda i: (i, 0)),      # x: streamed per batch tile
            pl.BlockSpec((d_in, H), lambda i: (0, 0)),       # w1: VMEM-resident
            pl.BlockSpec((1, H), lambda i: (0, 0)),          # b1: VMEM-resident
            pl.BlockSpec((1, H), lambda i: (0, 0)),          # w2 row: VMEM-resident
            pl.BlockSpec(memory_space=pltpu.MemorySpace.SMEM),  # b2: SMEM scalar
        ],
        out_specs=pl.BlockSpec((tb, 1), lambda i: (i, 0)),
        compiler_params=pltpu.CompilerParams(
            dimension_semantics=("parallel",),               # v7x: shard batch over 2 TCs
        ),
    )(x, w1, b1, w2_row, b2)

    return out[:B]


def init_params(key, in_dim, hidden=64, out_dim=1):
    """Deterministic init mimicking PyTorch nn.Linear's U(-1/sqrt(fan_in), 1/sqrt(fan_in))."""
    k1, k2, k3, k4 = jax.random.split(key, 4)
    bound1 = 1.0 / (in_dim ** 0.5)
    bound2 = 1.0 / (hidden ** 0.5)
    w1 = jax.random.uniform(k1, (in_dim, hidden), jnp.float32, -bound1, bound1)
    b1 = jax.random.uniform(k2, (1, hidden), jnp.float32, -bound1, bound1)
    w2 = jax.random.uniform(k3, (hidden, out_dim), jnp.float32, -bound2, bound2)
    b2 = jax.random.uniform(k4, (1, out_dim), jnp.float32, -bound2, bound2)
    return w1, b1, w2, b2


if __name__ == "__main__":
    # BipedalWalker-v3: obs_shape=(24,), action_shape=(4,) -> input dim 28.
    obs_dim, act_dim = 24, 4
    in_dim = obs_dim + act_dim

    key = jax.random.PRNGKey(0)
    k_x, k_p = jax.random.split(key)
    w1, b1, w2, b2 = init_params(k_p, in_dim)
    w2_row = w2.T                  # (1, 64)
    b2_s = b2.reshape(1)           # (1,)  -> SMEM scalar

    # --- small batch (single grid step), f32, tight check --------------------
    batch = 8
    x = jax.random.normal(k_x, (batch, in_dim), jnp.float32)
    out = jax.block_until_ready(critic_forward(x, w1, b1, w2_row, b2_s))
    ref = jnp.maximum(x @ w1 + b1, 0.0) @ w2 + b2
    assert out.shape == (batch, 1)
    assert jnp.allclose(out, ref, atol=1e-5, rtol=1e-5)

    # --- ragged batch exercising the grid + padding path ---------------------
    batch2 = 200
    x2 = jax.random.normal(jax.random.PRNGKey(1), (batch2, in_dim), jnp.float32)
    out2 = jax.block_until_ready(critic_forward(x2, w1, b1, w2_row, b2_s, block_b=64))
    ref2 = jnp.maximum(x2 @ w1 + b1, 0.0) @ w2 + b2
    assert out2.shape == (batch2, 1)
    assert jnp.allclose(out2, ref2, atol=1e-5, rtol=1e-5)

    # --- bf16 input/weight stream (v6e/v7x HBM-traffic halving), loose check --
    out_bf16 = jax.block_until_ready(
        critic_forward(x2.astype(jnp.bfloat16), w1.astype(jnp.bfloat16),
                       b1, w2_row, b2_s, block_b=64))
    assert jnp.allclose(out_bf16, ref2, atol=5e-2, rtol=5e-2)

    # TODO(synk): Adam optimizer state / .opt and CUDA device handling from the
    # PyTorch module are training-side concerns, not part of the forward pass.
    print("KERNEL_OK")
</pallas_src>

<mosaic_0001>
module attributes {stable_mosaic.version = 11 : i64} {
  func.func @critic_kernel(%arg0: i32, %arg1: memref<8x28xf32, #tpu.memory_space<vmem>>, %arg2: memref<28x64xf32, #tpu.memory_space<vmem>>, %arg3: memref<1x64xf32, #tpu.memory_space<vmem>>, %arg4: memref<1x64xf32, #tpu.memory_space<vmem>>, %arg5: memref<1xf32, #tpu.memory_space<smem>>, %arg6: memref<8x1xf32, #tpu.memory_space<vmem>>) attributes {dimension_semantics = [#tpu.dimension_semantics<parallel>], iteration_bounds = array<i64: 1>, scalar_prefetch = 0 : i64, scratch_operands = 0 : i64, tpu.core_type = #tpu.core_type<tc>, window_params = [{transform_indices = @transform_0, window_bounds = array<i64: 8, 28>}, {pipeline_mode = #tpu.pipeline_mode<synchronous>, transform_indices = @transform_1, window_bounds = array<i64: 28, 64>}, {pipeline_mode = #tpu.pipeline_mode<synchronous>, transform_indices = @transform_2, window_bounds = array<i64: 1, 64>}, {pipeline_mode = #tpu.pipeline_mode<synchronous>, transform_indices = @transform_3, window_bounds = array<i64: 1, 64>}, {transform_indices = @transform_4, window_bounds = array<i64: 1>}, {transform_indices = @transform_5, window_bounds = array<i64: 8, 1>}]} {
    %c0 = arith.constant 0 : index
    %c0_0 = arith.constant 0 : index
    %0 = vector.load %arg1[%c0, %c0_0] : memref<8x28xf32, #tpu.memory_space<vmem>>, vector<8x28xf32>
    %c0_1 = arith.constant 0 : index
    %c0_2 = arith.constant 0 : index
    %1 = vector.load %arg2[%c0_1, %c0_2] : memref<28x64xf32, #tpu.memory_space<vmem>>, vector<28x64xf32>
    %cst = arith.constant dense<0.000000e+00> : vector<8x64xf32>
    %2 = tpu.matmul %0, %1, %cst {dimension_numbers = #tpu.dot_dimension_numbers<[1], [0], [0], [1], [0, 0, 1, 1], [], []>} : vector<8x28xf32>, vector<28x64xf32>, vector<8x64xf32> -> vector<8x64xf32>
    %c0_3 = arith.constant 0 : index
    %c0_4 = arith.constant 0 : index
    %3 = vector.load %arg3[%c0_3, %c0_4] : memref<1x64xf32, #tpu.memory_space<vmem>>, vector<1x64xf32>
    %4 = vector.broadcast %3 : vector<1x64xf32> to vector<8x64xf32>
    %5 = arith.addf %2, %4 : vector<8x64xf32>
    %cst_5 = arith.constant 0.000000e+00 : f32
    %6 = vector.broadcast %cst_5 : f32 to vector<8x64xf32>
    %7 = arith.maximumf %5, %6 : vector<8x64xf32>
    %c0_6 = arith.constant 0 : index
    %c0_7 = arith.constant 0 : index
    %8 = vector.load %arg4[%c0_6, %c0_7] : memref<1x64xf32, #tpu.memory_space<vmem>>, vector<1x64xf32>
    %9 = vector.broadcast %8 : vector<1x64xf32> to vector<8x64xf32>
    %10 = arith.mulf %7, %9 : vector<8x64xf32>
    %cst_8 = arith.constant dense<0.000000e+00> : vector<8xf32>
    %11 = vector.multi_reduction <add>, %10, %cst_8 [1] : vector<8x64xf32> to vector<8xf32>
    %12 = vector.shape_cast %11 : vector<8xf32> to vector<8x1xf32>
    %c0_9 = arith.constant 0 : index
    %13 = memref.load %arg5[%c0_9] : memref<1xf32, #tpu.memory_space<smem>>
    %14 = vector.broadcast %13 : f32 to vector<8x1xf32>
    %15 = arith.addf %12, %14 : vector<8x1xf32>
    %c0_10 = arith.constant 0 : index
    %c0_11 = arith.constant 0 : index
    %16 = vector.load %arg6[%c0_10, %c0_11] : memref<8x1xf32, #tpu.memory_space<vmem>>, vector<8x1xf32>
    tpu.vector_store %arg6[%c0_10, %c0_11], %15 {strides = array<i32>} : memref<8x1xf32, #tpu.memory_space<vmem>>, vector<8x1xf32>,
    return
  }
  func.func @transform_0(%arg0: i32) -> (i32, i32) {
    %c0_i32 = arith.constant 0 : i32
    %c0_i32_0 = arith.constant 0 : i32
    return %arg0, %c0_i32 : i32, i32
  }
  func.func @transform_1(%arg0: i32) -> (i32, i32) {
    %c0_i32 = arith.constant 0 : i32
    %c0_i32_0 = arith.constant 0 : i32
    %c0_i32_1 = arith.constant 0 : i32
    return %c0_i32, %c0_i32_0 : i32, i32
  }
  func.func @transform_2(%arg0: i32) -> (i32, i32) {
    %c0_i32 = arith.constant 0 : i32
    %c0_i32_0 = arith.constant 0 : i32
    %c0_i32_1 = arith.constant 0 : i32
    return %c0_i32, %c0_i32_0 : i32, i32
  }
  func.func @transform_3(%arg0: i32) -> (i32, i32) {
    %c0_i32 = arith.constant 0 : i32
    %c0_i32_0 = arith.constant 0 : i32
    %c0_i32_1 = arith.constant 0 : i32
    return %c0_i32, %c0_i32_0 : i32, i32
  }
  func.func @transform_4(%arg0: i32) -> i32 {
    %c0_i32 = arith.constant 0 : i32
    %c0_i32_0 = arith.constant 0 : i32
    return %c0_i32 : i32
  }
  func.func @transform_5(%arg0: i32) -> (i32, i32) {
    %c0_i32 = arith.constant 0 : i32
    %c0_i32_0 = arith.constant 0 : i32
    return %arg0, %c0_i32 : i32, i32
  }
}

</mosaic_0001>

<bundles_post_ra>
// kernel: tpu_custom_call.1
= control target key start
LH: loop header
LB: loop body
LE: loop exit
PB: predicated region body
PF: predicated region fallthrough
CT: control target
= control target key end

     0   :  { %11 = vsyncpa [#allocation4], 0  ;;  %s325_s0 = inlined_call_operand.hbm [shape: f32[8,28], index: 0, kind: input, shape index: {}]   ;;  %s326_s1 = inlined_call_operand.hbm [shape: f32[28,64], index: 1, kind: input, shape index: {}]   ;;  %s327_s2 = inlined_call_operand.vmem [shape: f32[1,64], index: 2, kind: input, shape index: {}]   ;;  %s328_s3 = inlined_call_operand.vmem [shape: f32[1,64], index: 3, kind: input, shape index: {}]   ;;  %s329_s4 = inlined_call_operand.<no memory space> [shape: f32[1], index: 4, kind: input, shape index: {}]   ;;  %s330_s5 = inlined_call_operand.vmem [shape: f32[8,1], index: 5, kind: output, shape index: {}]  }
   0x1   :  { %12 = vsyncpa [#allocation6], 0  ;;  %s244_s18 = smov [#allocation3]   ;;  %s245_s20 = smov [#allocation5]  }
   0x2   :  { %s19_s19 = sshll.u32 %s244_s18, 4  ;;  %s28_s21 = sshll.u32 %s245_s20, 4  ;;  %s20_s19 = int_to_ptr.vmem [resolvable:$true] %s19_s19  ;;  %s282_s21 = int_to_ptr.vmem [resolvable:$true] %s28_s21 }
   0x3   :  { %s196_s24 = scalar_lea.hbm %s325_s0, 128 }
   0x4   :  { %p197_p0 = scmp.ne.s32.totalorder %s325_s0, %s196_s24  ;;  %p200_p1 = scmp.lt.u32.totalorder %s196_s24, %s325_s0 }
   0x6   :  { %p202_p2 = pnand %p200_p1, %p197_p0 }
   0x8   :  { %205 = shalt.err (!%p202_p2)
}
   0x9   :  { %s206_s29 = scalar_lea.vmem %s20_s19, 128  ;;  %p211_p4 = scmp.lt.s32.totalorder %s20_s19, %s20_s19 }
   0xa   :  { %p207_p3 = scmp.ne.s32.totalorder %s20_s19, %s206_s29  ;;  %p212_p5 = scmp.lt.s32.totalorder %s206_s29, %s206_s29 }
   0xc   :  { %p213_p6 = por %p212_p5, %p211_p4 }
   0xe   :  { %p214_p7 = pnand %p213_p6, %p207_p3 }
  0x10   :  { %217 = shalt.err (!%p214_p7)
}
  0x11   :  { %22 = dma.hbm_to_vmem [thread:$0]  %s325_s0, 128, %s20_s19, [#allocation4]  }
  0x12   :  { %s218_s9 = scalar_lea.hbm %s326_s1, 512 }
  0x13   :  { %p219_p8 = scmp.ne.s32.totalorder %s326_s1, %s218_s9  ;;  %p222_p9 = scmp.lt.u32.totalorder %s218_s9, %s326_s1 }
  0x15   :  { %p224_p10 = pnand %p222_p9, %p219_p8 }
  0x17   :  { %227 = shalt.err (!%p224_p10)
}
  0x18   :  { %s228_s14 = scalar_lea.vmem %s282_s21, 512  ;;  %p233_p12 = scmp.lt.s32.totalorder %s282_s21, %s282_s21 }
  0x19   :  { %p229_p11 = scmp.ne.s32.totalorder %s282_s21, %s228_s14  ;;  %p234_p13 = scmp.lt.s32.totalorder %s228_s14, %s228_s14 }
  0x1b   :  { %p235_p0 = por %p234_p13, %p233_p12 }
  0x1d   :  { %p236_p1 = pnand %p235_p0, %p229_p11 }
  0x1f   :  { %239 = shalt.err (!%p236_p1)
}
  0x20   :  { %s246_s0 = smov 128   ;;  %s247_s15 = smov 8  }
  0x21   :  { %34 = dma.hbm_to_vmem [thread:$0]  %s326_s1, 512, %s282_s21, [#allocation6], %s246_s0, %s246_s0, %s247_s15  }
  0x22   :  { %240 = dma.done.wait [#allocation4], 128  }
  0x23   :  { %241 = vsyncadd [#allocation4], 4294967168 }
  0x24   :  { %242 = dma.done.wait [#allocation6], 512  }
  0x25   :  { %243 = vsyncadd [#allocation6], 4294966784  ;;  %v248_v0 = vmov 0.0|0.0   ;;  %vm249_vm0 = vmmov 0   ;;  %v250_v1 = vmov 0.0   ;;  %v48_v2 = vld [vmem:[#allocation5] sm:$0xff]  ;;  %v151_v17 = vstv %s329_s4 }
  0x26   :  { %181 = vmatprep.subr.bf16.mxu0 %v248_v0  ;;  %178 = vmatprep.mubr.msk.f32.mxu0 %vm249_vm0, %v250_v1  ;;  %v49_v3 = vld [vmem:[#allocation5 + $0x8] sm:$0xff]  ;;  %v50_v4 = vld [vmem:[#allocation5 + $0x10] sm:$0xff]  ;;  %v51_v6 = vld [vmem:[#allocation5 + $0x18] sm:$0xf]  ;;  %vm63_vm1 = vcmask 1043456   ;;  %vm251_vm2 = vmmov 1  }
  0x27   :  { %v182_v5 = vpack.c.bf16 %v49_v3, %v48_v2  ;;  %v185_v7 = vpack.c.bf16 %v51_v6, %v50_v4  ;;  %vm186_vm3 = vmpackc.low %vm63_vm1, %vm251_vm2  ;;  %v47_v8 = vld [vmem:[#allocation3] sm:$0xff]  ;;  %vm59_vm4 = vcmask 228352   ;;  %vm146_vm5 = vcmask 523264  }
  0x28   :  { %v161_v9 = vld [vmem:[%s327_s2] ss:$0 sm:$0xff]  ;;  %vm153_vm6 = vcmask 7168  }
  0x29   :  { %183 = vmatpush3.bf16.msra.mxu0 %v182_v5  ;;  %v164_v13 = vld [vmem:[%s328_s3] ss:$0 sm:$0xff] }
  0x2a   :  { %184 = vmatprep.subr.bf16.mxu0 %v248_v0 }
  0x2d   :  { %187 = vmatpush3.bf16.msk.msra.mxu0 %vm186_vm3, %v185_v7 }
  0x30   :  { %179 = vmatmul.mubr.msk.f32.vlgmr.msra.gmra.mrb[0].mxu0 %vm59_vm4, %v47_v8 }
 0x103   :  { %v133_v10 = vpop.f32.mrb[0].mxu0 }
 0x104   :  { %v134_v11 = vadd.f32 %v161_v9, %v133_v10  ;;  %v180_v12 = vpop.f32.mrb[1].mxu0 }
 0x106   :  { %v137_v14 = vmax.f32 %v134_v11, 0.0 }
 0x108   :  { %v145_v15 = vmul.f32 %v164_v13, %v137_v14 }
 0x10a   :  { %v147_v16 = vsel %vm146_vm5, %v145_v15, 0.0 }
 0x10b   :  { %148 = vadd.xlane.f32.xlu0 %v147_v16 }
 0x198   :  { %v149_v18 = vpop.xlane.xlu0 %148 }
 0x199   :  { %v152_v19 = vadd.f32 %v151_v17, %v149_v18 }
 0x19b   :  { %154 = vst.msk [vmem:[%s330_s5] sm:$0xff] %vm153_vm6, %v152_v19 }
 0x19c   :  { %159 = vsyncpa [#allocation4], 1 }
 0x19d   :  { %160 = vsyncpa [#allocation6], 1 }

</bundles_post_ra>
